<compile_context>
chip_gen: v7x
topology: tpu7x:2x2x1
jax: 0.10.0
libtpu: 0.0.40
codegen_flags: <defaults>
</compile_context>

<pallas_src>
import functools

import jax
import jax.numpy as jnp
from jax.experimental import pallas as pl
from jax.experimental.pallas import tpu as pltpu

_LANE = 128


def _depth_sampler_kernel(p_ref, xy_ref, z_ref, out_ref):
    # p_ref  : SMEM (B, 12)          per-batch affine coefficients
    # xy_ref : VMEM (1, 2, S, 128)   planes [x, y]
    # z_ref  : VMEM (1, S, 128)      plane  [z]
    # out_ref: VMEM (1, 3, S, 128)   planes [wx, wy, wz]
    b = pl.program_id(0)
    a = [p_ref[b, i] for i in range(12)]

    x = xy_ref[0, 0, :, :]
    y = xy_ref[0, 1, :, :]
    z = z_ref[0, :, :]

    xz = x * z
    yz = y * z

    # world = cam2world @ lift(x, y, z), folded into per-row affine coefficients
    out_ref[0, 0, :, :] = a[0] * xz + a[1] * yz + a[2] * z + a[3]
    out_ref[0, 1, :, :] = a[4] * xz + a[5] * yz + a[6] * z + a[7]
    out_ref[0, 2, :, :] = a[8] * xz + a[9] * yz + a[10] * z + a[11]


def _round_up(v, m):
    return -(-v // m) * m


def _grid_semantics(B, n_tiles):
    """Both axes parallel; on v7x shard the larger axis across the 2 TensorCores."""
    par = getattr(pltpu, "PARALLEL", "parallel")
    sems = [par, par]
    core_par = getattr(pltpu, "CORE_PARALLEL", None)
    try:
        kind = jax.devices()[0].device_kind.lower()
    except Exception:  # pragma: no cover - defensive
        kind = ""
    if core_par is not None and "v7" in kind:
        sems[0 if B >= n_tiles else 1] = core_par
    return tuple(sems)


@functools.partial(jax.jit, static_argnames=("tile_rows",))
def depth_sampler_forward(xy, depth, cam2world, intrinsics, tile_rows=1024):
    """xy: (B,N,2), depth: (B,N,1), cam2world: (B,4,4), intrinsics: (B,3,3) or (B,4,4)."""
    B, N, _ = xy.shape

    rows0 = _round_up(max(1, -(-N // _LANE)), 8)     # sublane rows, multiple of 8
    n_tiles = -(-rows0 // tile_rows)                 # point tiles per batch
    S = _round_up(-(-rows0 // n_tiles), 8)           # rows per block, multiple of 8
    rows = n_tiles * S
    Np = rows * _LANE

    # --- glue: planar, lane-dense inputs (no concat; pad fuses into the copies) ---
    xy32 = xy.astype(jnp.float32)
    z32 = depth.astype(jnp.float32).reshape(B, N)
    xy_planes = jnp.transpose(xy32, (0, 2, 1))                     # (B, 2, N)
    xy_planes = jnp.pad(xy_planes, ((0, 0), (0, 0), (0, Np - N)))
    xy_planes = xy_planes.reshape(B, 2, rows, _LANE)
    z_planes = jnp.pad(z32, ((0, 0), (0, Np - N))).reshape(B, rows, _LANE)

    # --- fold intrinsics + cam2world into per-batch affine coefficients (B, 12) ---
    c = cam2world.astype(jnp.float32)
    intr = intrinsics.astype(jnp.float32)
    fx = intr[:, 0, 0]
    fy = intr[:, 1, 1]
    cx = intr[:, 0, 2]
    cy = intr[:, 1, 2]
    inv_fx = 1.0 / fx
    inv_fy = 1.0 / fy
    # world_row_i = a0*(x*z) + a1*(y*z) + a2*z + a3, for i = 0..2
    a0 = c[:, :3, 0] * inv_fx[:, None]                             # (B, 3)
    a1 = c[:, :3, 1] * inv_fy[:, None]
    a2 = c[:, :3, 2] - a0 * cx[:, None] - a1 * cy[:, None]
    a3 = c[:, :3, 3]
    params = jnp.stack([a0, a1, a2, a3], axis=-1).reshape(B, 12)   # SMEM table

    xy_spec = pl.BlockSpec((1, 2, S, _LANE), lambda b, t, p: (b, 0, t, 0))
    z_spec = pl.BlockSpec((1, S, _LANE), lambda b, t, p: (b, t, 0))
    out_spec = pl.BlockSpec((1, 3, S, _LANE), lambda b, t, p: (b, 0, t, 0))

    bytes_accessed = B * Np * (3 + 3) * 4 + B * 12 * 4
    cost = pl.CostEstimate(flops=20 * B * Np, transcendentals=0,
                           bytes_accessed=bytes_accessed)

    out = pl.pallas_call(
        _depth_sampler_kernel,
        out_shape=jax.ShapeDtypeStruct((B, 3, rows, _LANE), jnp.float32),
        grid_spec=pltpu.PrefetchScalarGridSpec(
            num_scalar_prefetch=1,
            grid=(B, n_tiles),
            in_specs=[xy_spec, z_spec],
            out_specs=out_spec),
        compiler_params=pltpu.CompilerParams(
            dimension_semantics=_grid_semantics(B, n_tiles)),
        cost_estimate=cost,
    )(params, xy_planes, z_planes)

    # single slice + transpose at the module interface: planar (B,3,N) -> (B,N,3)
    intersections = jnp.transpose(out.reshape(B, 3, Np)[:, :, :N], (0, 2, 1))
    # depth_from_world(world_from_xy_depth(...)) == input depth (identity, see header)
    depth_out = depth.astype(jnp.float32)
    return intersections, depth_out


class DepthSampler:
    """JAX/Pallas port of the PyTorch DepthSampler module."""

    def __call__(self, xy, depth, cam2world, intersection_net, intrinsics):
        # intersection_net is unused in the reference forward pass
        self.logs = []
        return depth_sampler_forward(xy, depth, cam2world, intrinsics)


def _reference_forward(xy, depth, cam2world, intrinsics):
    """Pure-JAX reference mirroring the PyTorch geometry.* functions."""
    B, N, _ = xy.shape
    x = xy[..., 0]
    y = xy[..., 1]
    z = depth.reshape(B, N)
    fx = intrinsics[:, 0, 0][:, None]
    fy = intrinsics[:, 1, 1][:, None]
    cx = intrinsics[:, 0, 2][:, None]
    cy = intrinsics[:, 1, 2][:, None]
    x_l = (x - cx) / fx * z
    y_l = (y - cy) / fy * z
    pts_cam = jnp.stack([x_l, y_l, z, jnp.ones_like(z)], axis=-1)     # (B,N,4)
    world = jnp.einsum("bij,bnj->bni", cam2world, pts_cam)[..., :3]   # (B,N,3)
    world_h = jnp.concatenate([world, jnp.ones((B, N, 1))], axis=-1)
    pts = jnp.einsum("bij,bnj->bni", jnp.linalg.inv(cam2world), world_h)
    return world, pts[..., 2:3]


if __name__ == "__main__":
    key = jax.random.PRNGKey(0)
    k1, k2 = jax.random.split(key)

    B, N = 2, 8

    # pixel coordinates and depths
    xy = jax.random.uniform(k1, (B, N, 2), jnp.float32, minval=0.0, maxval=16.0)
    depth = jax.random.uniform(k2, (B, N, 1), jnp.float32, minval=0.5, maxval=3.0)

    # deterministic, invertible cam2world: rotation about z + translation
    angles = jnp.array([0.3, -0.7], dtype=jnp.float32)
    ca, sa = jnp.cos(angles), jnp.sin(angles)
    zeros = jnp.zeros_like(ca)
    ones = jnp.ones_like(ca)
    R = jnp.stack([
        jnp.stack([ca, -sa, zeros], axis=-1),
        jnp.stack([sa, ca, zeros], axis=-1),
        jnp.stack([zeros, zeros, ones], axis=-1),
    ], axis=-2)                                            # (B,3,3)
    t = jnp.array([[0.5, -1.0, 2.0], [1.5, 0.25, -0.5]], dtype=jnp.float32)
    cam2world = jnp.zeros((B, 4, 4), jnp.float32)
    cam2world = cam2world.at[:, :3, :3].set(R)
    cam2world = cam2world.at[:, :3, 3].set(t)
    cam2world = cam2world.at[:, 3, 3].set(1.0)

    # intrinsics (fx, fy, cx, cy)
    intrinsics = jnp.zeros((B, 3, 3), jnp.float32)
    intrinsics = intrinsics.at[:, 0, 0].set(jnp.array([50.0, 45.0]))
    intrinsics = intrinsics.at[:, 1, 1].set(jnp.array([50.0, 45.0]))
    intrinsics = intrinsics.at[:, 0, 2].set(8.0)
    intrinsics = intrinsics.at[:, 1, 2].set(8.0)
    intrinsics = intrinsics.at[:, 2, 2].set(1.0)

    sampler = DepthSampler()
    intersections, depth_out = sampler(xy, depth, cam2world, None, intrinsics)
    jax.block_until_ready((intersections, depth_out))

    ref_int, ref_d = _reference_forward(xy, depth, cam2world, intrinsics)
    assert intersections.shape == (B, N, 3) and depth_out.shape == (B, N, 1)
    assert jnp.allclose(intersections, ref_int, atol=1e-4, rtol=1e-4)
    assert jnp.allclose(depth_out, ref_d, atol=1e-4, rtol=1e-4)

    print("KERNEL_OK")
</pallas_src>

<mosaic_0001>
module attributes {stable_mosaic.version = 11 : i64} {
  func.func @_depth_sampler_kernel(%arg0: i32, %arg1: i32, %arg2: memref<2x12xf32, #tpu.memory_space<smem>>, %arg3: memref<1x2x8x128xf32, #tpu.memory_space<vmem>>, %arg4: memref<1x8x128xf32, #tpu.memory_space<vmem>>, %arg5: memref<1x3x8x128xf32, #tpu.memory_space<vmem>>) attributes {dimension_semantics = [#tpu.dimension_semantics<parallel>, #tpu.dimension_semantics<parallel>], iteration_bounds = array<i64: 2, 1>, scalar_prefetch = 1 : i64, scratch_operands = 0 : i64, tpu.core_type = #tpu.core_type<tc>, window_params = [{transform_indices = @transform_0, window_bounds = array<i64: 1, 2, 8, 128>}, {transform_indices = @transform_1, window_bounds = array<i64: 1, 8, 128>}, {transform_indices = @transform_2, window_bounds = array<i64: 1, 3, 8, 128>}]} {
    %0 = arith.index_cast %arg0 : i32 to index
    %c0 = arith.constant 0 : index
    %1 = memref.load %arg2[%0, %c0] : memref<2x12xf32, #tpu.memory_space<smem>>
    %2 = arith.index_cast %arg0 : i32 to index
    %c1 = arith.constant 1 : index
    %3 = memref.load %arg2[%2, %c1] : memref<2x12xf32, #tpu.memory_space<smem>>
    %4 = arith.index_cast %arg0 : i32 to index
    %c2 = arith.constant 2 : index
    %5 = memref.load %arg2[%4, %c2] : memref<2x12xf32, #tpu.memory_space<smem>>
    %6 = arith.index_cast %arg0 : i32 to index
    %c3 = arith.constant 3 : index
    %7 = memref.load %arg2[%6, %c3] : memref<2x12xf32, #tpu.memory_space<smem>>
    %8 = arith.index_cast %arg0 : i32 to index
    %c4 = arith.constant 4 : index
    %9 = memref.load %arg2[%8, %c4] : memref<2x12xf32, #tpu.memory_space<smem>>
    %10 = arith.index_cast %arg0 : i32 to index
    %c5 = arith.constant 5 : index
    %11 = memref.load %arg2[%10, %c5] : memref<2x12xf32, #tpu.memory_space<smem>>
    %12 = arith.index_cast %arg0 : i32 to index
    %c6 = arith.constant 6 : index
    %13 = memref.load %arg2[%12, %c6] : memref<2x12xf32, #tpu.memory_space<smem>>
    %14 = arith.index_cast %arg0 : i32 to index
    %c7 = arith.constant 7 : index
    %15 = memref.load %arg2[%14, %c7] : memref<2x12xf32, #tpu.memory_space<smem>>
    %16 = arith.index_cast %arg0 : i32 to index
    %c8 = arith.constant 8 : index
    %17 = memref.load %arg2[%16, %c8] : memref<2x12xf32, #tpu.memory_space<smem>>
    %18 = arith.index_cast %arg0 : i32 to index
    %c9 = arith.constant 9 : index
    %19 = memref.load %arg2[%18, %c9] : memref<2x12xf32, #tpu.memory_space<smem>>
    %20 = arith.index_cast %arg0 : i32 to index
    %c10 = arith.constant 10 : index
    %21 = memref.load %arg2[%20, %c10] : memref<2x12xf32, #tpu.memory_space<smem>>
    %22 = arith.index_cast %arg0 : i32 to index
    %c11 = arith.constant 11 : index
    %23 = memref.load %arg2[%22, %c11] : memref<2x12xf32, #tpu.memory_space<smem>>
    %c0_0 = arith.constant 0 : index
    %c0_1 = arith.constant 0 : index
    %c0_2 = arith.constant 0 : index
    %c0_3 = arith.constant 0 : index
    %24 = vector.load %arg3[%c0_0, %c0_1, %c0_2, %c0_3] : memref<1x2x8x128xf32, #tpu.memory_space<vmem>>, vector<1x1x8x128xf32>
    %25 = vector.shape_cast %24 : vector<1x1x8x128xf32> to vector<8x128xf32>
    %c0_4 = arith.constant 0 : index
    %c1_5 = arith.constant 1 : index
    %c0_6 = arith.constant 0 : index
    %c0_7 = arith.constant 0 : index
    %26 = vector.load %arg3[%c0_4, %c1_5, %c0_6, %c0_7] : memref<1x2x8x128xf32, #tpu.memory_space<vmem>>, vector<1x1x8x128xf32>
    %27 = vector.shape_cast %26 : vector<1x1x8x128xf32> to vector<8x128xf32>
    %c0_8 = arith.constant 0 : index
    %c0_9 = arith.constant 0 : index
    %c0_10 = arith.constant 0 : index
    %28 = vector.load %arg4[%c0_8, %c0_9, %c0_10] : memref<1x8x128xf32, #tpu.memory_space<vmem>>, vector<1x8x128xf32>
    %29 = vector.shape_cast %28 : vector<1x8x128xf32> to vector<8x128xf32>
    %30 = arith.mulf %25, %29 : vector<8x128xf32>
    %31 = arith.mulf %27, %29 : vector<8x128xf32>
    %32 = vector.broadcast %1 : f32 to vector<8x128xf32>
    %33 = arith.mulf %32, %30 : vector<8x128xf32>
    %34 = vector.broadcast %3 : f32 to vector<8x128xf32>
    %35 = arith.mulf %34, %31 : vector<8x128xf32>
    %36 = arith.addf %33, %35 : vector<8x128xf32>
    %37 = vector.broadcast %5 : f32 to vector<8x128xf32>
    %38 = arith.mulf %37, %29 : vector<8x128xf32>
    %39 = arith.addf %36, %38 : vector<8x128xf32>
    %40 = vector.broadcast %7 : f32 to vector<8x128xf32>
    %41 = arith.addf %39, %40 : vector<8x128xf32>
    %c0_11 = arith.constant 0 : index
    %c0_12 = arith.constant 0 : index
    %c0_13 = arith.constant 0 : index
    %c0_14 = arith.constant 0 : index
    %42 = vector.load %arg5[%c0_11, %c0_12, %c0_13, %c0_14] : memref<1x3x8x128xf32, #tpu.memory_space<vmem>>, vector<1x1x8x128xf32>
    %43 = vector.shape_cast %42 : vector<1x1x8x128xf32> to vector<8x128xf32>
    %44 = vector.shape_cast %41 : vector<8x128xf32> to vector<1x1x8x128xf32>
    tpu.vector_store %arg5[%c0_11, %c0_12, %c0_13, %c0_14], %44 {strides = array<i32>} : memref<1x3x8x128xf32, #tpu.memory_space<vmem>>, vector<1x1x8x128xf32>,
    %45 = vector.broadcast %9 : f32 to vector<8x128xf32>
    %46 = arith.mulf %45, %30 : vector<8x128xf32>
    %47 = vector.broadcast %11 : f32 to vector<8x128xf32>
    %48 = arith.mulf %47, %31 : vector<8x128xf32>
    %49 = arith.addf %46, %48 : vector<8x128xf32>
    %50 = vector.broadcast %13 : f32 to vector<8x128xf32>
    %51 = arith.mulf %50, %29 : vector<8x128xf32>
    %52 = arith.addf %49, %51 : vector<8x128xf32>
    %53 = vector.broadcast %15 : f32 to vector<8x128xf32>
    %54 = arith.addf %52, %53 : vector<8x128xf32>
    %c0_15 = arith.constant 0 : index
    %c1_16 = arith.constant 1 : index
    %c0_17 = arith.constant 0 : index
    %c0_18 = arith.constant 0 : index
    %55 = vector.load %arg5[%c0_15, %c1_16, %c0_17, %c0_18] : memref<1x3x8x128xf32, #tpu.memory_space<vmem>>, vector<1x1x8x128xf32>
    %56 = vector.shape_cast %55 : vector<1x1x8x128xf32> to vector<8x128xf32>
    %57 = vector.shape_cast %54 : vector<8x128xf32> to vector<1x1x8x128xf32>
    tpu.vector_store %arg5[%c0_15, %c1_16, %c0_17, %c0_18], %57 {strides = array<i32>} : memref<1x3x8x128xf32, #tpu.memory_space<vmem>>, vector<1x1x8x128xf32>,
    %58 = vector.broadcast %17 : f32 to vector<8x128xf32>
    %59 = arith.mulf %58, %30 : vector<8x128xf32>
    %60 = vector.broadcast %19 : f32 to vector<8x128xf32>
    %61 = arith.mulf %60, %31 : vector<8x128xf32>
    %62 = arith.addf %59, %61 : vector<8x128xf32>
    %63 = vector.broadcast %21 : f32 to vector<8x128xf32>
    %64 = arith.mulf %63, %29 : vector<8x128xf32>
    %65 = arith.addf %62, %64 : vector<8x128xf32>
    %66 = vector.broadcast %23 : f32 to vector<8x128xf32>
    %67 = arith.addf %65, %66 : vector<8x128xf32>
    %c0_19 = arith.constant 0 : index
    %c2_20 = arith.constant 2 : index
    %c0_21 = arith.constant 0 : index
    %c0_22 = arith.constant 0 : index
    %68 = vector.load %arg5[%c0_19, %c2_20, %c0_21, %c0_22] : memref<1x3x8x128xf32, #tpu.memory_space<vmem>>, vector<1x1x8x128xf32>
    %69 = vector.shape_cast %68 : vector<1x1x8x128xf32> to vector<8x128xf32>
    %70 = vector.shape_cast %67 : vector<8x128xf32> to vector<1x1x8x128xf32>
    tpu.vector_store %arg5[%c0_19, %c2_20, %c0_21, %c0_22], %70 {strides = array<i32>} : memref<1x3x8x128xf32, #tpu.memory_space<vmem>>, vector<1x1x8x128xf32>,
    return
  }
  func.func @transform_0(%arg0: i32, %arg1: i32, %arg2: memref<2x12xf32, #tpu.memory_space<smem>>) -> (i32, i32, i32, i32) {
    %c0_i32 = arith.constant 0 : i32
    %c0_i32_0 = arith.constant 0 : i32
    %c0_i32_1 = arith.constant 0 : i32
    return %arg0, %c0_i32, %arg1, %c0_i32_0 : i32, i32, i32, i32
  }
  func.func @transform_1(%arg0: i32, %arg1: i32, %arg2: memref<2x12xf32, #tpu.memory_space<smem>>) -> (i32, i32, i32) {
    %c0_i32 = arith.constant 0 : i32
    %c0_i32_0 = arith.constant 0 : i32
    return %arg0, %arg1, %c0_i32 : i32, i32, i32
  }
  func.func @transform_2(%arg0: i32, %arg1: i32, %arg2: memref<2x12xf32, #tpu.memory_space<smem>>) -> (i32, i32, i32, i32) {
    %c0_i32 = arith.constant 0 : i32
    %c0_i32_0 = arith.constant 0 : i32
    %c0_i32_1 = arith.constant 0 : i32
    return %arg0, %c0_i32, %arg1, %c0_i32_0 : i32, i32, i32, i32
  }
}

</mosaic_0001>

<bundles_post_ra>
// kernel: depth_sampler_forward.1
= control target key start
LH: loop header
LB: loop body
LE: loop exit
PB: predicated region body
PF: predicated region fallthrough
CT: control target
= control target key end

     0   :  { %s532_s0 = inlined_call_operand.vmem [shape: f32[2,12], index: 0, kind: input, shape index: {}]   ;;  %s533_s1 = inlined_call_operand.vmem [shape: f32[2,2,8,128], index: 1, kind: input, shape index: {}]   ;;  %s534_s2 = inlined_call_operand.vmem [shape: f32[2,8,128], index: 2, kind: input, shape index: {}]   ;;  %s535_s3 = inlined_call_operand.vmem [shape: f32[2,3,8,128], index: 3, kind: output, shape index: {}]  }
   0x1   :  { %s8_s14 = sshll.u32 %s532_s0, 4  ;;  %s9_s14 = int_to_ptr.vmem [resolvable:$true] %s8_s14 }
   0x2   :  { %s415_s15 = scalar_lea.vmem %s9_s14, 32  ;;  %p420_p1 = scmp.lt.s32.totalorder %s9_s14, %s9_s14 }
   0x3   :  { %p416_p0 = scmp.ne.s32.totalorder %s9_s14, %s415_s15  ;;  %p421_p2 = scmp.lt.s32.totalorder %s415_s15, %s415_s15 }
   0x5   :  { %p422_p3 = por %p421_p2, %p420_p1 }
   0x7   :  { %p423_p4 = pnand %p422_p3, %p416_p0 }
   0x9   :  { %426 = shalt.err (!%p423_p4)  }
   0xa   :  { %s453_s16 = smov [#allocation3]  }
   0xb   :  { %11 = dma.vmem_to_smem %s9_s14, 32, %s453_s16, [#allocation2] }
   0xc   :  { %439 = dma.done.wait [#allocation2], 32 }
   0xd   :  { %440 = vsyncadd [#allocation2], 4294967264 }
   0xe   :  { %13 = sfence }
   0xf   :  { %s477_s17 = smov 0   ;;  %s479_s18 = smov 0  }
  0x10   :  { %s481_s19 = smov 0  }
  0x11 LB: > { %s31_s0 = sadd.s32 1, %s447_s18  ;;  %p377_p5 = scmp.ge.s32.totalorder %s451_s19, 1  ;;  %s451_s19 = sphi %s481_s19, %s19_s19   ;;  %s447_s18 = sphi %s479_s18, %s537_s18   ;;  %s443_s17 = sphi %s477_s17, %s536_s17  }
  0x12   : > { %p33_p6 = scmp.ge.s32.totalorder %s31_s0, 2  ;;  %p152_p7 = scmp.lt.s32.totalorder %s451_s19, 3 }
  0x14   : > { %s539_s0 = smov (%p33_p6, %s31_s0), 0  ;;  %p153_p8 = pnand %p377_p5, %p152_p7 }
  0x15   : > { %p187_p9 = scmp.lt.s32.totalorder (!%p153_p8), %s443_s17, 1  ;;  %s495_s20 = sshll.u32 (!%p153_p8), %s443_s17, 7 }
  0x16   : > { %156 = sbr.rel (%p153_p8) target bundleno = 51 (0x33), region = 28  ;;  %s211_s21 = sld [smem:[#allocation3 + %s495_s20]] (!%p153_p8) }
  0x17   : > { %s212_s22 = sadd.s32 (!%p153_p8), 1, %s495_s20  ;;  %s214_s24 = sadd.s32 (!%p153_p8), 2, %s495_s20 }
  0x18   : > { %s213_s23 = sld [smem:[#allocation3 + %s212_s22]] (!%p153_p8)  ;;  %s216_s7 = sadd.s32 (!%p153_p8), 3, %s495_s20 }
  0x19   : > { %s215_s6 = sld [smem:[#allocation3 + %s214_s24]] (!%p153_p8)  ;;  %s218_s8 = sadd.s32 (!%p153_p8), 4, %s495_s20 }
  0x1a   : > { %s217_s10 = sld [smem:[#allocation3 + %s216_s7]] (!%p153_p8)  ;;  %s220_s12 = sadd.s32 (!%p153_p8), 5, %s495_s20 }
  0x1b   : > { %s219_s11 = sld [smem:[#allocation3 + %s218_s8]] (!%p153_p8)  ;;  %s222_s14 = sadd.s32 (!%p153_p8), 6, %s495_s20 }
  0x1c   : > { %v240_v5 = vstv (!%p153_p8), %s211_s21  ;;  %s221_s13 = sld [smem:[#allocation3 + %s220_s12]] (!%p153_p8)  ;;  %s224_s16 = sadd.s32 (!%p153_p8), 7, %s495_s20 }
  0x1d   : > { %s541_s17 = smov (!%p187_p9, %s443_s17), 1  ;;  %s223_s15 = sld [smem:[#allocation3 + %s222_s14]] }
  0x1e   : > { %s388_s25 = sshll.u32 %s541_s17, 4  ;;  %s380_s26 = sshll.u32 %s541_s17, 3  ;;  %v242_v7 = vstv %s213_s23 }
  0x1f   : > { %s194_s29 = scalar_lea.vmem %s533_s1, %s388_s25  ;;  %s201_s5 = scalar_lea.vmem %s534_s2, %s380_s26  ;;  %v245_v10 = vstv %s215_s6 }
  0x20   : > { %v234_v0 = vld [vmem:[%s194_s29] sm:$0xff]  ;;  %v383_v1 = vld [vmem:[%s194_s29 + $0x8] sm:$0xff]  ;;  %s389_s9 = smul.u32 24, %s541_s17  ;;  %s225_s22 = sld [smem:[#allocation3 + %s224_s16]]  ;;  %v248_v12 = vstv %s217_s10 }
  0x21   : > { %v237_v2 = vld [vmem:[%s201_s5] sm:$0xff]  ;;  %s226_s21 = sadd.s32 8, %s495_s20  ;;  %s228_s17 = sadd.s32 9, %s495_s20  ;;  %v251_v14 = vstv %s219_s11 }
  0x22   : > { %v238_v3 = vmul.f32 %v237_v2, %v234_v0  ;;  %v239_v4 = vmul.f32 %v383_v1, %v237_v2  ;;  %v246_v11 = vmul.f32 %v245_v10, %v237_v2  ;;  %s227_s24 = sld [smem:[#allocation3 + %s226_s21]]  ;;  %s230_s26 = sadd.s32 10, %s495_s20  ;;  %v253_v16 = vstv %s221_s13 }
  0x23   : > { %s229_s25 = sld [smem:[#allocation3 + %s228_s17]]  ;;  %s232_s27 = sadd.s32 11, %s495_s20  ;;  %v256_v19 = vstv %s223_s15 }
  0x24   : > { %v241_v6 = vmul.f32 %v240_v5, %v238_v3  ;;  %v243_v8 = vmul.f32 %v242_v7, %v239_v4  ;;  %s231_s23 = sld [smem:[#allocation3 + %s230_s26]]  ;;  %s209_s30 = scalar_lea.vmem %s535_s3, %s389_s9  ;;  %v252_v15 = vmul.f32 %v251_v14, %v238_v3  ;;  %v254_v18 = vmul.f32 %v253_v16, %v239_v4 }
  0x25   : > { %s233_s4 = sld [smem:[#allocation3 + %s232_s27]]  ;;  %v257_v20 = vmul.f32 %v256_v19, %v237_v2 }
  0x26   : > { %v244_v9 = vadd.f32 %v243_v8, %v241_v6  ;;  %v255_v21 = vadd.f32 %v254_v18, %v252_v15  ;;  %v259_v23 = vstv %s225_s22 }
  0x28   : > { %v247_v13 = vadd.f32 %v246_v11, %v244_v9  ;;  %v263_v22 = vstv %s227_s24  ;;  %v258_v26 = vadd.f32 %v257_v20, %v255_v21 }
  0x29   : > { %v264_v24 = vmul.f32 %v263_v22, %v238_v3  ;;  %v265_v25 = vstv %s229_s25 }
  0x2a   : > { %v249_v17 = vadd.f32 %v248_v12, %v247_v13  ;;  %v266_v27 = vmul.f32 %v265_v25, %v239_v4  ;;  %v268_v28 = vstv %s231_s23  ;;  %v260_v30 = vadd.f32 %v259_v23, %v258_v26 }
  0x2b   : > { %v269_v29 = vmul.f32 %v268_v28, %v237_v2  ;;  %v271_v32 = vstv %s233_s4 }
  0x2c   : > { %250 = vst [vmem:[%s209_s30] sm:$0xff] %v249_v17  ;;  %v267_v31 = vadd.f32 %v266_v27, %v264_v24  ;;  %384 = vst [vmem:[%s209_s30 + $0x8] sm:$0xff] %v260_v30 }
  0x2e   : > { %v270_v33 = vadd.f32 %v269_v29, %v267_v31 }
  0x30   : > { %v272_v34 = vadd.f32 %v271_v32, %v270_v33 }
  0x32   : > { %385 = vst [vmem:[%s209_s30 + $0x10] sm:$0xff] %v272_v34 }
  0x33 PF: > { %s19_s19 = sadd.s32 1, %s451_s19   ;;  %s536_s17 = smov %s447_s18 }
  0x34   : > { %p16_p10 = scmp.ge.s32.totalorder %s19_s19, 4   ;;  %s537_s18 = smov %s539_s0 }
  0x36   :  { %18 = sbr.rel (!%p16_p10) target bundleno = 17 (0x11), region = 64 }

</bundles_post_ra>
